<compile_context>
chip_gen: v6e
topology: v6e:2x2x1
jax: 0.10.0
libtpu: 0.0.40
codegen_flags: <defaults>
</compile_context>

<pallas_src>
import math

import jax
import jax.numpy as jnp
from jax.experimental import pallas as pl
from jax.experimental.pallas import tpu as pltpu


# ----------------------------------------------------------------------------
# host glue: dense separable bilinear-interpolation matrix, zero-padded to the
# size_divisible-aligned output extent, bf16, optionally pre-transposed.
# (matches F.interpolate(mode='bilinear', align_corners=False, scale_factor=sf):
#  src = clamp((dst + 0.5)/sf - 0.5), linear weights between floor/ceil rows)
# ----------------------------------------------------------------------------
def _bilinear_matrix(in_size, out_size, padded_out, scale_factor, transpose):
    # TODO(synk): torchvision's recompute_scale_factor path samples with
    # out_size/in_size instead of the requested scale_factor; sample positions
    # can differ slightly when floor(in*sf) != in*sf.
    dst = jnp.arange(out_size, dtype=jnp.float32)
    src = jnp.clip((dst + 0.5) / jnp.float32(scale_factor) - 0.5,
                   0.0, float(in_size - 1))
    i0f = jnp.floor(src)
    frac = src - i0f                                    # in [0, 1) after clamping
    i0 = i0f.astype(jnp.int32)
    i1 = jnp.minimum(i0 + 1, in_size - 1)
    w0 = (1.0 - frac)[:, None] * jax.nn.one_hot(i0, in_size, dtype=jnp.float32)
    w1 = frac[:, None] * jax.nn.one_hot(i1, in_size, dtype=jnp.float32)
    m = w0 + w1                                         # (out_size, in_size)
    # zero-pad rows so the kernel writes the full canvas and padding stays 0
    m = jnp.pad(m, ((0, padded_out - out_size), (0, 0)))
    if transpose:
        m = m.T                                         # (in_size, padded_out)
    return m.astype(jnp.bfloat16)


# ----------------------------------------------------------------------------
# Pallas kernels: separable bilinear resize (2 bf16 MXU matmuls, f32 acc) with
# the normalization folded AFTER the matmuls onto the small (TOH, WB) output
# tile, then a single full-block store into the batched canvas.
# ----------------------------------------------------------------------------
def _resize_norm_pad_kernel(inv_std_ref, mean_s_ref, hw_ref, x_ref, wh_ref,
                            ww_ref, out_ref):
    c = pl.program_id(0)
    r = pl.program_id(1)
    toh, wb = out_ref.shape[2], out_ref.shape[3]
    # separable resize: (Wh_tile @ x) @ Ww   (Ww pre-transposed on the host)
    t = jnp.dot(wh_ref[...], x_ref[0], preferred_element_type=jnp.float32)   # (TOH, W)
    y = jnp.dot(t.astype(jnp.bfloat16), ww_ref[...],
                preferred_element_type=jnp.float32)                          # (TOH, WB)
    # normalization on the output tile only: resize is linear and its weights sum
    # to 1 on valid pixels / are exactly 0 on padded ones, so
    #   resize((x-mean)/std) == resize(x)*inv_std - mean*inv_std*valid_mask
    rows = r * toh + jax.lax.broadcasted_iota(jnp.int32, (toh, wb), 0)
    cols = jax.lax.broadcasted_iota(jnp.int32, (toh, wb), 1)
    valid = jnp.logical_and(rows < hw_ref[0], cols < hw_ref[1])
    mean_term = jnp.where(valid, mean_s_ref[c], jnp.float32(0.0))
    # single unmasked full-block store; padding stays exactly 0.
    out_ref[0, 0, :, :] = y * inv_std_ref[c] - mean_term


def _resize_norm_pad_kernel_aliased(inv_std_ref, mean_s_ref, hw_ref, x_ref,
                                    wh_ref, ww_ref, canvas_ref, out_ref):
    del canvas_ref  # aliased with the output; written only through out_ref
    _resize_norm_pad_kernel(inv_std_ref, mean_s_ref, hw_ref, x_ref, wh_ref,
                            ww_ref, out_ref)


def _row_tile_cap():
    # v4/v5 MXUs are 128 wide (M=128 already full); v6e/v7x are 256 wide.
    try:
        kind = jax.devices()[0].device_kind.lower()
    except Exception:
        return 256
    return 128 if ("v4" in kind or "v5" in kind) else 256


def _row_tile(hb, cap):
    # Largest multiple of 16 (bf16 sublane granularity of the wh tile) that
    # divides HB and is <= cap.  HB is a multiple of size_divisible=32, so this
    # never collapses below 32 (e.g. HB=800 -> 160, HB=1344 -> 224).
    start = max(16, (min(cap, hb) // 16) * 16)
    for t in range(start, 15, -16):
        if hb % t == 0:
            return t
    return hb


def _process_image_into(canvas, image_bf16, wh, ww, inv_std, mean_scaled, hw,
                        n_index, batch_shape):
    """Writes the resized+normalized+padded image into slice `n_index` of the
    (N, C, HB, WB) batch canvas.  canvas=None on the first image: that call
    allocates the canvas un-aliased (no zero-fill is needed because across the N
    calls every block of every image slice is fully written exactly once)."""
    N, Cc, HB, WB = batch_shape
    C, H, W = image_bf16.shape
    TOH = _row_tile(HB, _row_tile_cap())
    R = HB // TOH

    # per-step working set (bytes); used to pick the scoped-VMEM limit and to
    # decide whether the big r-resident operands should be single-buffered.
    ch_b, wh_b, ww_b = 2 * H * W, 2 * TOH * H, 2 * W * WB
    out_b, t_b = 4 * TOH * WB, 4 * TOH * W
    ws = 2 * (ch_b + wh_b + ww_b + out_b) + t_b
    vmem_limit = int(min(max(ws + (8 << 20), 32 << 20), 100 << 20))

    # single-buffer large operands whose block index is constant along r: halves
    # peak VMEM (matters on v7x, 64 MiB) and only exposes one DMA per channel.
    img_kwargs = {"pipeline_mode": pl.Buffered(1)} if ch_b > (8 << 20) else {}
    ww_kwargs = {"pipeline_mode": pl.Buffered(1)} if ww_b > (4 << 20) else {}

    flops = 2.0 * C * (HB * H * W + HB * W * WB)          # two (padded) matmuls
    bytes_accessed = 2 * C * H * W + 4 * C * HB * WB + 2 * (HB * H + W * WB)
    cost = pl.CostEstimate(flops=int(flops), transcendentals=0,
                           bytes_accessed=int(bytes_accessed))

    in_specs = [
        pl.BlockSpec(memory_space=pltpu.MemorySpace.SMEM),        # inv_std (C,)
        pl.BlockSpec(memory_space=pltpu.MemorySpace.SMEM),        # mean*inv_std (C,)
        pl.BlockSpec(memory_space=pltpu.MemorySpace.SMEM),        # (oh, ow) int32
        pl.BlockSpec((1, H, W), lambda c, r: (c, 0, 0),
                     **img_kwargs),                               # bf16 channel, resident over r
        pl.BlockSpec((TOH, H), lambda c, r: (r, 0)),              # padded H interp tile (bf16)
        pl.BlockSpec((W, WB), lambda c, r: (0, 0), **ww_kwargs),  # padded, pre-T W matrix (bf16)
    ]
    args = [inv_std, mean_scaled, hw, image_bf16, wh, ww]
    kernel = _resize_norm_pad_kernel
    aliases = {}
    if canvas is not None:
        in_specs.append(pl.BlockSpec(memory_space=pl.ANY))        # canvas (aliased to output)
        args.append(canvas)
        kernel = _resize_norm_pad_kernel_aliased
        aliases = {6: 0}

    return pl.pallas_call(
        kernel,
        out_shape=jax.ShapeDtypeStruct((N, Cc, HB, WB), jnp.float32),
        grid=(C, R),
        in_specs=in_specs,
        out_specs=pl.BlockSpec((1, 1, TOH, WB),
                               lambda c, r: (n_index, c, r, 0)),
        input_output_aliases=aliases,
        compiler_params=pltpu.CompilerParams(
            dimension_semantics=("parallel", "parallel"),
            vmem_limit_bytes=vmem_limit),
        cost_estimate=cost,
    )(*args)


# ----------------------------------------------------------------------------
# host glue: box resize (tiny N x 4 arrays — kept in plain JAX)
# ----------------------------------------------------------------------------
def _resize_boxes(boxes, original_size, new_size):
    ratio_h = jnp.float32(new_size[0]) / jnp.float32(original_size[0])
    ratio_w = jnp.float32(new_size[1]) / jnp.float32(original_size[1])
    xmin, ymin, xmax, ymax = (boxes[:, 0], boxes[:, 1], boxes[:, 2], boxes[:, 3])
    return jnp.stack(
        [xmin * ratio_w, ymin * ratio_h, xmax * ratio_w, ymax * ratio_h], axis=1
    )


# ----------------------------------------------------------------------------
# forward: mirrors GeneralizedRCNNTransform.forward in eval mode
# ----------------------------------------------------------------------------
def generalized_rcnn_transform_forward(
    images, image_mean, image_std, min_size, max_size, targets=None, size_divisible=32
):
    if not isinstance(min_size, (list, tuple)):
        min_size = (min_size,)
    self_min = float(min_size[-1])  # eval-mode size choice
    # TODO(synk): training-mode random min_size choice (torch_choice) not modeled.

    out_sizes, scale_factors = [], []
    for img in images:
        assert img.ndim == 3, "images is expected to be a list of 3d tensors"
        H, W = img.shape[-2:]
        mn, mx = float(min(H, W)), float(max(H, W))
        sf = self_min / mn
        if mx * sf > float(max_size):
            sf = float(max_size) / mx
        out_sizes.append((int(math.floor(H * sf)), int(math.floor(W * sf))))
        scale_factors.append(sf)

    max_h = max(s[0] for s in out_sizes)
    max_w = max(s[1] for s in out_sizes)
    HB = int(math.ceil(max_h / float(size_divisible)) * size_divisible)
    WB = int(math.ceil(max_w / float(size_divisible)) * size_divisible)

    N = len(images)
    C = images[0].shape[0]
    batch_shape = (N, C, HB, WB)

    std = jnp.asarray(image_std, jnp.float32)
    mean = jnp.asarray(image_mean, jnp.float32)
    inv_std = 1.0 / std
    mean_scaled = mean * inv_std

    whs, wws, hws = [], [], []
    for img, (oh, ow), sf in zip(images, out_sizes, scale_factors):
        H, W = img.shape[-2:]
        whs.append(_bilinear_matrix(H, oh, HB, sf, transpose=False))   # (HB, H)
        wws.append(_bilinear_matrix(W, ow, WB, sf, transpose=True))    # (W, WB)
        hws.append(jnp.array([oh, ow], jnp.int32))

    def _batch(images_t, whs_t, wws_t, hws_t, inv_std_, mean_scaled_):
        canvas = None   # first call allocates; no zero-fill needed
        for n in range(N):
            img_bf16 = images_t[n].astype(jnp.bfloat16)
            canvas = _process_image_into(canvas, img_bf16, whs_t[n], wws_t[n],
                                         inv_std_, mean_scaled_, hws_t[n],
                                         n, batch_shape)
        return canvas

    batched_imgs = jax.jit(_batch)(tuple(images), tuple(whs), tuple(wws),
                                   tuple(hws), inv_std, mean_scaled)   # (N, C, HB, WB)

    new_targets = None
    if targets is not None:
        new_targets = []
        for tgt, img, out_hw in zip(targets, images, out_sizes):
            H, W = img.shape[-2:]
            nt = dict(tgt)
            if "boxes" in tgt:
                nt["boxes"] = _resize_boxes(tgt["boxes"], (H, W), out_hw)
            new_targets.append(nt)

    # ImageList equivalent: (batched tensor, list of per-image resized sizes)
    image_list = (batched_imgs, out_sizes)
    return image_list, new_targets


if __name__ == "__main__":
    key = jax.random.PRNGKey(0)
    k1, k2, k3, k4 = jax.random.split(key, 4)

    # deterministic "parameters" from __init__
    image_mean = [0.485, 0.456, 0.406]
    image_std = [0.229, 0.224, 0.225]
    min_size = 24
    max_size = 32

    # small example inputs: two CHW images of different sizes
    img0 = jax.random.uniform(k1, (3, 16, 20), dtype=jnp.float32)
    img1 = jax.random.uniform(k2, (3, 18, 14), dtype=jnp.float32)
    boxes0 = jax.random.uniform(k3, (5, 4), dtype=jnp.float32) * 16.0
    boxes1 = jax.random.uniform(k4, (4, 4), dtype=jnp.float32) * 14.0
    targets = [{"boxes": boxes0}, {"boxes": boxes1}]

    (batched, image_sizes), new_targets = generalized_rcnn_transform_forward(
        [img0, img1], image_mean, image_std, min_size, max_size, targets=targets
    )

    jax.block_until_ready(batched)
    for t in new_targets:
        jax.block_until_ready(t["boxes"])

    # shape / padding sanity checks
    assert batched.shape == (2, 3, 32, 32)
    assert batched.shape[2] % 32 == 0 and batched.shape[3] % 32 == 0
    (oh0, ow0), (oh1, ow1) = image_sizes
    assert float(jnp.max(jnp.abs(batched[0, :, oh0:, :]))) < 1e-6
    assert float(jnp.max(jnp.abs(batched[0, :, :, ow0:]))) < 1e-6
    assert float(jnp.max(jnp.abs(batched[1, :, oh1:, :]))) < 1e-6
    assert float(jnp.max(jnp.abs(batched[1, :, :, ow1:]))) < 1e-6

    # numerical sanity check vs a plain-JAX normalize-then-resize reference
    # (bf16 matmuls + post-resize normalization -> loose tolerance)
    mean_j = jnp.asarray(image_mean, jnp.float32)
    std_j = jnp.asarray(image_std, jnp.float32)
    for n, (img, (oh, ow), sf) in enumerate(
            zip([img0, img1], image_sizes,
                [None, None])):
        H, W = img.shape[-2:]
        # rebuild the same (padded) interp matrices and apply them in f32
        sfac = 24.0 / min(H, W)
        if max(H, W) * sfac > 32.0:
            sfac = 32.0 / max(H, W)
        whf = _bilinear_matrix(H, oh, 32, sfac, False).astype(jnp.float32)
        wwf = _bilinear_matrix(W, ow, 32, sfac, True).astype(jnp.float32)
        xn = (img - mean_j[:, None, None]) / std_j[:, None, None]
        ref = jnp.einsum("ah,chw,wb->cab", whf, xn, wwf)
        assert float(jnp.max(jnp.abs(batched[n] - ref))) < 0.1

    print("KERNEL_OK")
</pallas_src>

<mosaic_0001>
module attributes {stable_mosaic.version = 11 : i64} {
  func.func @_resize_norm_pad_kernel_aliased(%arg0: i32, %arg1: i32, %arg2: memref<3xf32, #tpu.memory_space<smem>>, %arg3: memref<3xf32, #tpu.memory_space<smem>>, %arg4: memref<2xi32, #tpu.memory_space<smem>>, %arg5: memref<1x18x14xbf16, #tpu.memory_space<vmem>>, %arg6: memref<32x18xbf16, #tpu.memory_space<vmem>>, %arg7: memref<14x32xbf16, #tpu.memory_space<vmem>>, %arg8: memref<2x3x32x32xf32, #tpu.memory_space<any>>, %arg9: memref<1x1x32x32xf32, #tpu.memory_space<vmem>>) attributes {dimension_semantics = [#tpu.dimension_semantics<parallel>, #tpu.dimension_semantics<parallel>], iteration_bounds = array<i64: 3, 1>, scalar_prefetch = 0 : i64, scratch_operands = 0 : i64, tpu.core_type = #tpu.core_type<tc>, window_params = [{transform_indices = @transform_0, window_bounds = array<i64: 3>}, {transform_indices = @transform_1, window_bounds = array<i64: 3>}, {transform_indices = @transform_2, window_bounds = array<i64: 2>}, {transform_indices = @transform_3, window_bounds = array<i64: 1, 18, 14>}, {transform_indices = @transform_4, window_bounds = array<i64: 32, 18>}, {pipeline_mode = #tpu.pipeline_mode<synchronous>, transform_indices = @transform_5, window_bounds = array<i64: 14, 32>}, {}, {transform_indices = @transform_7, window_bounds = array<i64: 1, 1, 32, 32>}]} {
    %c0 = arith.constant 0 : index
    %c0_0 = arith.constant 0 : index
    %0 = vector.load %arg6[%c0, %c0_0] : memref<32x18xbf16, #tpu.memory_space<vmem>>, vector<32x18xbf16>
    %c0_1 = arith.constant 0 : index
    %c0_2 = arith.constant 0 : index
    %c0_3 = arith.constant 0 : index
    %1 = vector.load %arg5[%c0_1, %c0_2, %c0_3] : memref<1x18x14xbf16, #tpu.memory_space<vmem>>, vector<1x18x14xbf16>
    %2 = vector.shape_cast %1 : vector<1x18x14xbf16> to vector<18x14xbf16>
    %cst = arith.constant dense<0.000000e+00> : vector<32x14xf32>
    %3 = tpu.matmul %0, %2, %cst {dimension_numbers = #tpu.dot_dimension_numbers<[1], [0], [0], [1], [0, 0, 1, 1], [], []>} : vector<32x18xbf16>, vector<18x14xbf16>, vector<32x14xf32> -> vector<32x14xf32>
    %4 = arith.truncf %3 : vector<32x14xf32> to vector<32x14xbf16>
    %c0_4 = arith.constant 0 : index
    %c0_5 = arith.constant 0 : index
    %5 = vector.load %arg7[%c0_4, %c0_5] : memref<14x32xbf16, #tpu.memory_space<vmem>>, vector<14x32xbf16>
    %cst_6 = arith.constant dense<0.000000e+00> : vector<32x32xf32>
    %6 = tpu.matmul %4, %5, %cst_6 {dimension_numbers = #tpu.dot_dimension_numbers<[1], [0], [0], [1], [0, 0, 1, 1], [], []>} : vector<32x14xbf16>, vector<14x32xbf16>, vector<32x32xf32> -> vector<32x32xf32>
    %c32_i32 = arith.constant 32 : i32
    %7 = arith.muli %arg1, %c32_i32 : i32
    %8 = tpu.iota {dimensions = array<i32: 0>} : vector<32x32xi32>
    %9 = vector.broadcast %7 : i32 to vector<32x32xi32>
    %10 = arith.addi %9, %8 : vector<32x32xi32>
    %11 = tpu.iota {dimensions = array<i32: 1>} : vector<32x32xi32>
    %c0_7 = arith.constant 0 : index
    %12 = memref.load %arg4[%c0_7] : memref<2xi32, #tpu.memory_space<smem>>
    %13 = vector.broadcast %12 : i32 to vector<32x32xi32>
    %14 = arith.cmpi slt, %10, %13 : vector<32x32xi32>
    %c1 = arith.constant 1 : index
    %15 = memref.load %arg4[%c1] : memref<2xi32, #tpu.memory_space<smem>>
    %16 = vector.broadcast %15 : i32 to vector<32x32xi32>
    %17 = arith.cmpi slt, %11, %16 : vector<32x32xi32>
    %18 = arith.andi %14, %17 : vector<32x32xi1>
    %19 = arith.index_cast %arg0 : i32 to index
    %20 = memref.load %arg3[%19] : memref<3xf32, #tpu.memory_space<smem>>
    %cst_8 = arith.constant 0.000000e+00 : f32
    %21 = vector.broadcast %20 : f32 to vector<32x32xf32>
    %22 = vector.broadcast %cst_8 : f32 to vector<32x32xf32>
    %23 = arith.select %18, %21, %22 : vector<32x32xi1>, vector<32x32xf32>
    %24 = arith.index_cast %arg0 : i32 to index
    %25 = memref.load %arg2[%24] : memref<3xf32, #tpu.memory_space<smem>>
    %26 = vector.broadcast %25 : f32 to vector<32x32xf32>
    %27 = arith.mulf %6, %26 : vector<32x32xf32>
    %28 = arith.subf %27, %23 : vector<32x32xf32>
    %c0_9 = arith.constant 0 : index
    %c0_10 = arith.constant 0 : index
    %c0_11 = arith.constant 0 : index
    %c0_12 = arith.constant 0 : index
    %29 = vector.load %arg9[%c0_9, %c0_10, %c0_11, %c0_12] : memref<1x1x32x32xf32, #tpu.memory_space<vmem>>, vector<1x1x32x32xf32>
    %30 = vector.shape_cast %29 : vector<1x1x32x32xf32> to vector<32x32xf32>
    %31 = vector.shape_cast %28 : vector<32x32xf32> to vector<1x1x32x32xf32>
    tpu.vector_store %arg9[%c0_9, %c0_10, %c0_11, %c0_12], %31 {strides = array<i32>} : memref<1x1x32x32xf32, #tpu.memory_space<vmem>>, vector<1x1x32x32xf32>,
    return
  }
  func.func @transform_0(%arg0: i32, %arg1: i32) -> i32 {
    %c0_i32 = arith.constant 0 : i32
    %c0_i32_0 = arith.constant 0 : i32
    return %c0_i32 : i32
  }
  func.func @transform_1(%arg0: i32, %arg1: i32) -> i32 {
    %c0_i32 = arith.constant 0 : i32
    %c0_i32_0 = arith.constant 0 : i32
    return %c0_i32 : i32
  }
  func.func @transform_2(%arg0: i32, %arg1: i32) -> i32 {
    %c0_i32 = arith.constant 0 : i32
    %c0_i32_0 = arith.constant 0 : i32
    return %c0_i32 : i32
  }
  func.func @transform_3(%arg0: i32, %arg1: i32) -> (i32, i32, i32) {
    %c0_i32 = arith.constant 0 : i32
    %c0_i32_0 = arith.constant 0 : i32
    %c0_i32_1 = arith.constant 0 : i32
    return %arg0, %c0_i32, %c0_i32_0 : i32, i32, i32
  }
  func.func @transform_4(%arg0: i32, %arg1: i32) -> (i32, i32) {
    %c0_i32 = arith.constant 0 : i32
    %c0_i32_0 = arith.constant 0 : i32
    return %arg1, %c0_i32 : i32, i32
  }
  func.func @transform_5(%arg0: i32, %arg1: i32) -> (i32, i32) {
    %c0_i32 = arith.constant 0 : i32
    %c0_i32_0 = arith.constant 0 : i32
    %c0_i32_1 = arith.constant 0 : i32
    return %c0_i32, %c0_i32_0 : i32, i32
  }
  func.func @transform_7(%arg0: i32, %arg1: i32) -> (i32, i32, i32, i32) {
    %c1_i32 = arith.constant 1 : i32
    %c0_i32 = arith.constant 0 : i32
    %c0_i32_0 = arith.constant 0 : i32
    return %c1_i32, %arg0, %arg1, %c0_i32 : i32, i32, i32, i32
  }
}

module attributes {stable_mosaic.version = 11 : i64} {
  func.func @_resize_norm_pad_kernel(%arg0: i32, %arg1: i32, %arg2: memref<3xf32, #tpu.memory_space<smem>>, %arg3: memref<3xf32, #tpu.memory_space<smem>>, %arg4: memref<2xi32, #tpu.memory_space<smem>>, %arg5: memref<1x16x20xbf16, #tpu.memory_space<vmem>>, %arg6: memref<32x16xbf16, #tpu.memory_space<vmem>>, %arg7: memref<20x32xbf16, #tpu.memory_space<vmem>>, %arg8: memref<1x1x32x32xf32, #tpu.memory_space<vmem>>) attributes {dimension_semantics = [#tpu.dimension_semantics<parallel>, #tpu.dimension_semantics<parallel>], iteration_bounds = array<i64: 3, 1>, scalar_prefetch = 0 : i64, scratch_operands = 0 : i64, tpu.core_type = #tpu.core_type<tc>, window_params = [{transform_indices = @transform_0, window_bounds = array<i64: 3>}, {transform_indices = @transform_1, window_bounds = array<i64: 3>}, {transform_indices = @transform_2, window_bounds = array<i64: 2>}, {transform_indices = @transform_3, window_bounds = array<i64: 1, 16, 20>}, {transform_indices = @transform_4, window_bounds = array<i64: 32, 16>}, {pipeline_mode = #tpu.pipeline_mode<synchronous>, transform_indices = @transform_5, window_bounds = array<i64: 20, 32>}, {transform_indices = @transform_6, window_bounds = array<i64: 1, 1, 32, 32>}]} {
    %c0 = arith.constant 0 : index
    %c0_0 = arith.constant 0 : index
    %0 = vector.load %arg6[%c0, %c0_0] : memref<32x16xbf16, #tpu.memory_space<vmem>>, vector<32x16xbf16>
    %c0_1 = arith.constant 0 : index
    %c0_2 = arith.constant 0 : index
    %c0_3 = arith.constant 0 : index
    %1 = vector.load %arg5[%c0_1, %c0_2, %c0_3] : memref<1x16x20xbf16, #tpu.memory_space<vmem>>, vector<1x16x20xbf16>
    %2 = vector.shape_cast %1 : vector<1x16x20xbf16> to vector<16x20xbf16>
    %cst = arith.constant dense<0.000000e+00> : vector<32x20xf32>
    %3 = tpu.matmul %0, %2, %cst {dimension_numbers = #tpu.dot_dimension_numbers<[1], [0], [0], [1], [0, 0, 1, 1], [], []>} : vector<32x16xbf16>, vector<16x20xbf16>, vector<32x20xf32> -> vector<32x20xf32>
    %4 = arith.truncf %3 : vector<32x20xf32> to vector<32x20xbf16>
    %c0_4 = arith.constant 0 : index
    %c0_5 = arith.constant 0 : index
    %5 = vector.load %arg7[%c0_4, %c0_5] : memref<20x32xbf16, #tpu.memory_space<vmem>>, vector<20x32xbf16>
    %cst_6 = arith.constant dense<0.000000e+00> : vector<32x32xf32>
    %6 = tpu.matmul %4, %5, %cst_6 {dimension_numbers = #tpu.dot_dimension_numbers<[1], [0], [0], [1], [0, 0, 1, 1], [], []>} : vector<32x20xbf16>, vector<20x32xbf16>, vector<32x32xf32> -> vector<32x32xf32>
    %c32_i32 = arith.constant 32 : i32
    %7 = arith.muli %arg1, %c32_i32 : i32
    %8 = tpu.iota {dimensions = array<i32: 0>} : vector<32x32xi32>
    %9 = vector.broadcast %7 : i32 to vector<32x32xi32>
    %10 = arith.addi %9, %8 : vector<32x32xi32>
    %11 = tpu.iota {dimensions = array<i32: 1>} : vector<32x32xi32>
    %c0_7 = arith.constant 0 : index
    %12 = memref.load %arg4[%c0_7] : memref<2xi32, #tpu.memory_space<smem>>
    %13 = vector.broadcast %12 : i32 to vector<32x32xi32>
    %14 = arith.cmpi slt, %10, %13 : vector<32x32xi32>
    %c1 = arith.constant 1 : index
    %15 = memref.load %arg4[%c1] : memref<2xi32, #tpu.memory_space<smem>>
    %16 = vector.broadcast %15 : i32 to vector<32x32xi32>
    %17 = arith.cmpi slt, %11, %16 : vector<32x32xi32>
    %18 = arith.andi %14, %17 : vector<32x32xi1>
    %19 = arith.index_cast %arg0 : i32 to index
    %20 = memref.load %arg3[%19] : memref<3xf32, #tpu.memory_space<smem>>
    %cst_8 = arith.constant 0.000000e+00 : f32
    %21 = vector.broadcast %20 : f32 to vector<32x32xf32>
    %22 = vector.broadcast %cst_8 : f32 to vector<32x32xf32>
    %23 = arith.select %18, %21, %22 : vector<32x32xi1>, vector<32x32xf32>
    %24 = arith.index_cast %arg0 : i32 to index
    %25 = memref.load %arg2[%24] : memref<3xf32, #tpu.memory_space<smem>>
    %26 = vector.broadcast %25 : f32 to vector<32x32xf32>
    %27 = arith.mulf %6, %26 : vector<32x32xf32>
    %28 = arith.subf %27, %23 : vector<32x32xf32>
    %c0_9 = arith.constant 0 : index
    %c0_10 = arith.constant 0 : index
    %c0_11 = arith.constant 0 : index
    %c0_12 = arith.constant 0 : index
    %29 = vector.load %arg8[%c0_9, %c0_10, %c0_11, %c0_12] : memref<1x1x32x32xf32, #tpu.memory_space<vmem>>, vector<1x1x32x32xf32>
    %30 = vector.shape_cast %29 : vector<1x1x32x32xf32> to vector<32x32xf32>
    %31 = vector.shape_cast %28 : vector<32x32xf32> to vector<1x1x32x32xf32>
    tpu.vector_store %arg8[%c0_9, %c0_10, %c0_11, %c0_12], %31 {strides = array<i32>} : memref<1x1x32x32xf32, #tpu.memory_space<vmem>>, vector<1x1x32x32xf32>,
    return
  }
  func.func @transform_0(%arg0: i32, %arg1: i32) -> i32 {
    %c0_i32 = arith.constant 0 : i32
    %c0_i32_0 = arith.constant 0 : i32
    return %c0_i32 : i32
  }
  func.func @transform_1(%arg0: i32, %arg1: i32) -> i32 {
    %c0_i32 = arith.constant 0 : i32
    %c0_i32_0 = arith.constant 0 : i32
    return %c0_i32 : i32
  }
  func.func @transform_2(%arg0: i32, %arg1: i32) -> i32 {
    %c0_i32 = arith.constant 0 : i32
    %c0_i32_0 = arith.constant 0 : i32
    return %c0_i32 : i32
  }
  func.func @transform_3(%arg0: i32, %arg1: i32) -> (i32, i32, i32) {
    %c0_i32 = arith.constant 0 : i32
    %c0_i32_0 = arith.constant 0 : i32
    %c0_i32_1 = arith.constant 0 : i32
    return %arg0, %c0_i32, %c0_i32_0 : i32, i32, i32
  }
  func.func @transform_4(%arg0: i32, %arg1: i32) -> (i32, i32) {
    %c0_i32 = arith.constant 0 : i32
    %c0_i32_0 = arith.constant 0 : i32
    return %arg1, %c0_i32 : i32, i32
  }
  func.func @transform_5(%arg0: i32, %arg1: i32) -> (i32, i32) {
    %c0_i32 = arith.constant 0 : i32
    %c0_i32_0 = arith.constant 0 : i32
    %c0_i32_1 = arith.constant 0 : i32
    return %c0_i32, %c0_i32_0 : i32, i32
  }
  func.func @transform_6(%arg0: i32, %arg1: i32) -> (i32, i32, i32, i32) {
    %c0_i32 = arith.constant 0 : i32
    %c0_i32_0 = arith.constant 0 : i32
    %c0_i32_1 = arith.constant 0 : i32
    return %c0_i32, %arg0, %arg1, %c0_i32_0 : i32, i32, i32, i32
  }
}

</mosaic_0001>

<bundles_post_ra>
// kernel: _batch.3
= control target key start
LH: loop header
LB: loop body
LE: loop exit
PB: predicated region body
PF: predicated region fallthrough
CT: control target
= control target key end

     0   :  { %12 = vsyncpa [#allocation4], 0  ;;  %s1210_s0 = inlined_call_operand.vmem [shape: f32[3], index: 0, kind: input, shape index: {}]   ;;  %s1211_s1 = inlined_call_operand.vmem [shape: f32[3], index: 1, kind: input, shape index: {}]   ;;  %s1212_s2 = inlined_call_operand.vmem [shape: s32[2], index: 2, kind: input, shape index: {}]   ;;  %s1213_s3 = inlined_call_operand.vmem [shape: bf16[3,18,14], index: 3, kind: input, shape index: {}]   ;;  %s1214_s4 = inlined_call_operand.vmem [shape: bf16[32,18], index: 4, kind: input, shape index: {}]   ;;  %s1215_s5 = inlined_call_operand.vmem [shape: bf16[14,32], index: 5, kind: input, shape index: {}]   ;;  %s1216_s6 = inlined_call_operand.hbm [shape: f32[2,3,32,32], index: 6, kind: input, shape index: {}, may-alias: {6,7}]   ;;  %s1217_s7 = inlined_call_operand.hbm [shape: f32[2,3,32,32], index: 7, kind: output, shape index: {}, may-alias: {6,7}]  }
   0x1   :  { %13 = vsyncpa [#allocation6], 0 }
   0x2   :  { %14 = vsyncpa [#allocation3], 0 }
   0x3   :  { %16 = vsyncpa [#allocation3 + $0x1], 0  ;;  %s992_s24 = smov 0   ;;  %s994_s25 = smov 0  }
   0x4   :  { %s996_s26 = smov 0   ;;  %s998_s27 = smov 0  }
   0x5   :  { %s1000_s28 = smov 0   ;;  %s1002_s29 = smov 0  }
   0x6 LB: > { %s667_s6 = sadd.s32 4294967295, %s944_s29   ;;  %s668_s30 = sadd.s32 4294967294, %s944_s29   ;;  %s944_s29 = sphi %s1002_s29, %s22_s29   ;;  %s940_s28 = sphi %s1000_s28, %s1243_s28   ;;  %s936_s27 = sphi %s998_s27, %s1242_s27   ;;  %s932_s26 = sphi %s996_s26, %s1241_s26   ;;  %s928_s25 = sphi %s994_s25, %s1240_s25   ;;  %s924_s24 = sphi %s992_s24, %s1239_s24  }
   0x7   : > { %s34_s8 = sadd.s32 1, %s940_s28  ;;  %s179_s9 = sadd.s32 1, %s932_s26 }
   0x8   : > { %p36_p0 = scmp.ge.s32.totalorder %s34_s8, 3  ;;  %p189_p1 = scmp.ne.s32.totalorder %s932_s26, %s928_s25 }
   0x9   : > { %p190_p2 = scmp.eq.s32.totalorder %s667_s6, 2  ;;  %p195_p3 = scmp.ne.s32.totalorder %s928_s25, %s924_s24 }
   0xa   : > { %s1245_s8 = smov (%p36_p0, %s34_s8), 0  ;;  %p196_p5 = scmp.eq.s32.totalorder %s668_s30, 2 }
   0xb   : > { %p1032_p4 = por %p190_p2, %p189_p1  ;;  %s174_s11 = ssub.s32 %s940_s28, %s1245_s8 }
   0xc   : > { %p669_p6 = scmp.ge.s32.totalorder %s944_s29, 1  ;;  %p177_p7 = scmp.eq.s32.totalorder %s174_s11, 0 }
   0xd   : > { %s1222_s10 = scalar_select %p1032_p4, 1, 0 }
   0xe   : > { %p1039_p8 = por %p196_p5, %p195_p3  ;;  %p203_p9 = scmp.lt.s32.totalorder %s944_s29, 4 }
   0xf   : > { %s1045_s13 = scalar_select %p177_p7, %s932_s26, %s179_s9  }
  0x10   : > { %s1223_s12 = scalar_select %p1039_p8, 1, 0 }
  0x11   : > { %p1047_p10 = pnand %p669_p6, %p203_p9  ;;  %p1051_p11 = scmp.eq.s32.totalorder %s667_s6, 0 }
  0x12   : > { %s227_s18 = sshll.u32 %s1211_s1, 4  ;;  %s216_s21 = sshll.u32 %s1210_s0, 4  ;;  %s228_s18 = int_to_ptr.vmem [resolvable:$true] %s227_s18  ;;  %s217_s21 = int_to_ptr.vmem [resolvable:$true] %s216_s21 }
  0x13   : > { %s1224_s14 = scalar_select %p1047_p10, 1, 0 }
  0x14   : > { %s1225_s15 = scalar_select %p1051_p11, 1, 0 }
  0x15   : > { %p735_p12 = pneg %p1047_p10  ;;  %s238_s30 = sshll.u32 %s1212_s2, 4  ;;  %s239_s30 = int_to_ptr.vmem [resolvable:$true] %s238_s30 }
  0x16   : > { %s814_s9 = scalar_lea.vmem %s228_s18, 16  ;;  %p822_p5 = scmp.lt.s32.totalorder %s228_s18, %s228_s18 }
  0x17   : > { %p1065_p13 = pnand %p1051_p11, %p735_p12  ;;  %p815_p0 = scmp.ne.s32.totalorder %s228_s18, %s814_s9 }
  0x18   : > { %p823_p6 = scmp.lt.s32.totalorder %s814_s9, %s814_s9 }
  0x19   : > { %p816_p1 = pneg %p1065_p13 }
  0x1a   : > { %p824_p7 = por %p823_p6, %p822_p5 }
  0x1b   : > { %p817_p2 = pnand %p816_p1, %p815_p0 }
  0x1d   : > { %p818_p3 = pneg %p817_p2 }
  0x1f   : > { %p825_p9 = pnand %p824_p7, %p818_p3 }
  0x21   : > { %828 = shalt.err (!%p825_p9)
}
  0x22   : > { %s946_s11 = smov [#allocation5]   ;;  %s829_s16 = scalar_lea.vmem %s217_s21, 16 }
  0x23   : > { %741 = dma.vmem_to_smem (!%p1065_p13), %s228_s18, 16, %s946_s11, [#allocation6]  }
  0x24   : > { %p830_p12 = scmp.ne.s32.totalorder %s217_s21, %s829_s16  ;;  %p837_p11 = scmp.lt.s32.totalorder %s217_s21, %s217_s21 }
  0x25   : > { %p838_p10 = scmp.lt.s32.totalorder %s829_s16, %s829_s16 }
  0x26   : > { %p832_p8 = pnand %p830_p12, %p816_p1 }
  0x27   : > { %p839_p0 = por %p838_p10, %p837_p11 }
  0x28   : > { %p833_p4 = pneg %p832_p8 }
  0x2a   : > { %p840_p2 = pnand %p839_p0, %p833_p4 }
  0x2c   : > { %843 = shalt.err (!%p840_p2)
}
  0x2d   : > { %s947_s17 = smov [#allocation2]   ;;  %s844_s19 = scalar_lea.vmem %s239_s30, 16 }
  0x2e   : > { %738 = dma.vmem_to_smem (!%p1065_p13), %s217_s21, 16, %s947_s17, [#allocation4]  }
  0x2f   : > { %p845_p3 = scmp.ne.s32.totalorder %s239_s30, %s844_s19  ;;  %p852_p7 = scmp.lt.s32.totalorder %s239_s30, %s239_s30 }
  0x30   : > { %p853_p9 = scmp.lt.s32.totalorder %s844_s19, %s844_s19 }
  0x31   : > { %p847_p5 = pnand %p845_p3, %p816_p1 }
  0x32   : > { %p854_p8 = por %p853_p9, %p852_p7 }
  0x33   : > { %p848_p6 = pneg %p847_p5 }
  0x35   : > { %p855_p12 = pnand %p854_p8, %p848_p6 }
  0x37   : > { %858 = shalt.err (!%p855_p12)
}
  0x38   : > { %s948_s18 = smov [#allocation7]   ;;  %p1227_p4 = scmp.ne.s32.totalorder %s1224_s14, 0 }
  0x39   : > { %744 = dma.vmem_to_smem (!%p1065_p13), %s239_s30, 16, %s948_s18, [#allocation6]  }
  0x3a   : > { %271 = sbr.rel (%p1227_p4) target bundleno = 503 (0x1f7), region = 44  ;;  %p1228_p10 = scmp.ne.s32.totalorder (!%p1227_p4), %s1225_s15, 0 }
  0x3f   : > { %911 = dma.done.wait (%p1228_p10), [#allocation4], 16  }
  0x40   : > { %913 = vsyncadd (%p1228_p10), [#allocation4], 4294967280 }
  0x41   : > { %915 = dma.done.wait (%p1228_p10), [#allocation6], 32  }
  0x42   : > { %917 = vsyncadd (%p1228_p10), [#allocation6], 4294967264 }
  0x43   : > { %285 = sfence }
  0x44   : > { %p315_p11 = scmp.lt.s32.totalorder %s936_s27, 2  ;;  %v811_v0 = vld [vmem:[%s1214_s4] sm:$0xff]   ;;  %vm354_vm0 = vcmask 146432   ;;  %vm361_vm1 = vcmask 1040384   ;;  %v812_v4 = vld [vmem:[%s1214_s4 + $0x8] sm:$0xff]   ;;  %vm430_vm2 = vcmask 1046528   ;;  %v484_v13 = vlaneseq }
  0x45   : > { %708 = vmatprep.mubr.msk.bf16.mxu0 %vm354_vm0, %v811_v0  ;;  %v813_v5 = vld [vmem:[%s1215_s5] sm:$0x7f]   ;;  %vm423_vm3 = vcmask 113664   ;;  %s496_s17 = sld [smem:[#allocation7]]  ;;  %s312_s21 = sand.u32 1, %s928_s25   ;;  %vm525_vm12 = vcmask 261120  }
  0x46   : > { %s316_s14 = scalar_select %p315_p11, %s936_s27, 2  ;;  %719 = vmatprep.subr.msk.bf16.mxu1 %vm430_vm2, %v813_v5  ;;  %v432_v6 = vsel %vm430_vm2, %v813_v5, 0  ;;  %v485_v14 = vshrl.u32 %v484_v13, 7  ;;  %v495_v16 = vand.u32 127, %v484_v13 }
  0x47   : > { %713 = vmatpush3.bf16.msra.mxu1 %v432_v6  ;;  %s690_s19 = sld [smem:[#allocation7 + $0x1]]  ;;  %s1165_s11 = scalar_lea.sflag [#allocation3], %s312_s21 }
  0x48   : > { %s720_s22 = smul.u32 12, %s316_s14  ;;  %s509_s18 = sld [smem:[#allocation5 + %s936_s27]]  ;;  %v487_v15 = vadd.s32 16, %v485_v14  ;;  %v488_v20 = vadd.s32 24, %v485_v14  ;;  %v486_v21 = vadd.s32 8, %v485_v14 }
  0x49   : > { %s515_s20 = sld [smem:[#allocation2 + %s936_s27]]  ;;  %s679_s14 = sshll.u32 %s312_s21, 5 }
  0x4a   : > { %s319_s30 = scalar_lea.vmem %s1213_s3, %s720_s22  ;;  %s696_s22 = sshll.u32 %s936_s27, 9 }
  0x4b   : > { %v809_v1 = vld [vmem:[%s319_s30 + $0x8] ss:$0 sps:$4 sm:$0x11]   ;;  %v810_v2 = vld [vmem:[%s319_s30] sm:$0xff]   ;;  %v497_v17 = vstv %s496_s17  ;;  %s314_s23 = scalar_lea.vmem [#allocation8], %s679_s14  ;;  %s1151_s15 = scalar_lea.hbm %s1217_s7, %s696_s22 }
  0x4c   : > { %718 = vmatprep.subr.msk.bf16.mxu0 %vm361_vm1, %v809_v1  ;;  %v363_v3 = vsel %vm361_vm1, %v809_v1, 0  ;;  %vm500_vm4 = vcmp.lt.s32.totalorder %v487_v15, %v497_v17  ;;  %vm498_vm6 = vcmp.lt.s32.totalorder %v485_v14, %v497_v17  ;;  %vm501_vm8 = vcmp.lt.s32.totalorder %v488_v20, %v497_v17  ;;  %s547_s6 = sshll.u32 %s314_s23, 4  ;;  %s1157_s9 = scalar_lea.hbm %s1151_s15, 1536  ;;  %s1159_s6 = int_to_ptr.vmem [resolvable:$true] %s547_s6 }
  0x4d   : > { %705 = vmatpush3.bf16.msra.mxu0 %v363_v3  ;;  %v503_v18 = vstv %s690_s19  ;;  %vm499_vm10 = vcmp.lt.s32.totalorder %v486_v21, %v497_v17  ;;  %s859_s16 = scalar_lea.vmem %s1159_s6, 512  ;;  %p1237_p1 = scmp.ne.s32.totalorder %s1222_s10, 0 }
  0x4e   : > { %706 = vmatprep.subr.bf16.mxu0 %v810_v2  ;;  %vm1115_vm5 = vcmp.lt.s32.totalorder %v495_v16, %v503_v18  ;;  %v510_v22 = vstv %s509_s18  ;;  %p860_p13 = scmp.ne.s32.totalorder %s1159_s6, %s859_s16  ;;  %s949_s17 = smov [#allocation8]  }
  0x4f   : > { %vm507_vm7 = vmand %vm500_vm4, %vm1115_vm5  ;;  %v516_v23 = vstv %s515_s20  ;;  %s863_s19 = sshll.u32 %s949_s17, 4  ;;  %s864_s19 = int_to_ptr.vmem [resolvable:$false] %s863_s19 }
  0x50   : > { %vm1126_vm9 = vmand %vm498_vm6, %vm1115_vm5  ;;  %v513_v26 = vsel %vm507_vm7, %v510_v22, 0.0  ;;  %p861_p0 = pnand %p860_p13, %p1237_p1  ;;  %s865_s18 = scalar_lea.vmem %s864_s19, 1024 }
  0x51   : > { %707 = vmatpush3.bf16.msra.mxu0 %v810_v2  ;;  %vm1132_vm11 = vmand %vm501_vm8, %vm1115_vm5  ;;  %v511_v30 = vsel %vm1126_vm9, %v510_v22, 0.0  ;;  %p866_p3 = scmp.lt.s32.totalorder %s1159_s6, %s864_s19  ;;  %p867_p5 = scmp.lt.s32.totalorder %s865_s18, %s859_s16 }
  0x52   : > { %vm1141_vm13 = vmand %vm499_vm10, %vm1115_vm5  ;;  %v514_v35 = vsel %vm1132_vm11, %v510_v22, 0.0  ;;  %p862_p2 = pneg %p861_p0 }
  0x53   : > { %v512_v39 = vsel %vm1141_vm13, %v510_v22, 0.0  ;;  %p868_p6 = por %p867_p5, %p866_p3 }
  0x54   : > { %709 = vmatmul.mubr.msk.bf16.vlgmr.msra.gmra.mxu0 %vm354_vm0, %v812_v4 }
  0x55   : > { %p869_p7 = pnand %p868_p6, %p862_p2 }
 0x114   : > { %v710_v7 = vpop.f32.mrf.mxu0 }
 0x116   : > { %v399_v8 = vpop.f32.mrf.mxu0 }
 0x118   : > { %v711_v9 = vpop.f32.mrf.mxu0 }
 0x119   : > { %v415_v12 = vpack.c.bf16 %v711_v9, %v710_v7 }
 0x11a   : > { %v402_v10 = vpop.f32.mrf.mxu0 }
 0x11b   : > { %v414_v11 = vpack.c.bf16 %v402_v10, %v399_v8 }
 0x11d   : > { %714 = vmatprep.mubr.msk.bf16.mxu1 %vm423_vm3, %v414_v11 }
 0x11e   : > { %715 = vmatmul.mubr.msk.bf16.vlgmr.msra.gmra.mxu1 %vm423_vm3, %v415_v12 }
 0x1de   : > { %v716_v25 = vpop.f32.mrf.mxu1 }
 0x1df   : > { %v519_v27 = vmul.f32 %v716_v25, %v516_v23 }
 0x1e0   : > { %v468_v29 = vpop.f32.mrf.mxu1 }
 0x1e1   : > { %v523_v31 = vsub.f32 %v519_v27, %v513_v26  ;;  %v517_v32 = vmul.f32 %v516_v23, %v468_v29 }
 0x1e2   : > { %v717_v34 = vpop.f32.mrf.mxu1 }
 0x1e3   : > { %528 = vst.msk [vmem:[%s314_s23 + $0x10] sm:$0xff] %vm525_vm12, %v523_v31  ;;  %v521_v36 = vsub.f32 %v517_v32, %v511_v30  ;;  %v520_v37 = vmul.f32 %v717_v34, %v516_v23 }
 0x1e4   : > { %v471_v38 = vpop.f32.mrf.mxu1 }
 0x1e5   : > { %526 = vst.msk [vmem:[%s314_s23] sm:$0xff] %vm525_vm12, %v521_v36  ;;  %v524_v40 = vsub.f32 %v520_v37, %v514_v35  ;;  %v518_v41 = vmul.f32 %v516_v23, %v471_v38 }
 0x1e7   : > { %529 = vst.msk [vmem:[%s314_s23 + $0x18] sm:$0xff] %vm525_vm12, %v524_v40  ;;  %v522_v42 = vsub.f32 %v518_v41, %v512_v39 }
 0x1e9   : > { %527 = vst.msk [vmem:[%s314_s23 + $0x8] sm:$0xff] %vm525_vm12, %v522_v42 }
 0x1ea   : > { %872 = shalt.err (!%p869_p7)
}
 0x1eb   : > { %s885_s20 = scalar_lea.hbm %s1151_s15, 2048  ;;  %s877_s22 = scalar_lea.hbm %s1217_s7, 3072 }
 0x1ec   : > { %p874_p9 = scmp.ne.s32.totalorder %s1157_s9, %s885_s20  ;;  %p878_p4 = scmp.lt.s32.totalorder %s1157_s9, %s1217_s7 }
 0x1ed   : > { %p879_p10 = scmp.lt.s32.totalorder %s877_s22, %s885_s20 }
 0x1ee   : > { %p875_p8 = pnand %p874_p9, %p1237_p1 }
 0x1ef   : > { %p880_p11 = por %p879_p10, %p878_p4 }
 0x1f0   : > { %p876_p12 = pneg %p875_p8 }
 0x1f2   : > { %p881_p13 = pnand %p880_p11, %p876_p12 }
 0x1f4   : > { %884 = shalt.err (!%p881_p13)
}
 0x1f5   : > { %s950_s30 = smov 128   ;;  %s951_s15 = smov 8  }
 0x1f6   : > { %733 = dma.vmem_to_hbm [thread:$0]  (%p1237_p1), %s1159_s6, 512, %s1157_s9, %s1165_s11, %s950_s30, %s950_s30, %s951_s15  }
 0x1f7 PF: > { %p755_p0 = scmp.ge.s32.totalorder %s944_s29, 2  ;;  %s562_s16 = sand.u32 1, %s924_s24  }
 0x1f8   : > { %p1238_p2 = scmp.ne.s32.totalorder %s1223_s12, 0  ;;  %s563_s17 = scalar_lea.sflag [#allocation3], %s562_s16 }
 0x1fa   : > { %p746_p3 = pnand %p755_p0, %p1238_p2 }
 0x1fc   : > { %p747_p5 = pneg %p746_p3 }
 0x1fe   : > { %919 = dma.done.wait (%p747_p5), %s563_s17, 512  }
 0x1ff   : > { %921 = vsyncadd (%p747_p5), %s563_s17, 4294966784  ;;  %s22_s29 = sadd.s32 1, %s944_s29   ;;  %s1239_s24 = smov %s928_s25 }
 0x200   : > { %p19_p6 = scmp.ge.s32.totalorder %s22_s29, 5   ;;  %s1240_s25 = smov %s932_s26 }
 0x201   : > { %s1241_s26 = smov %s1045_s13  ;;  %s1242_s27 = smov %s940_s28 }
 0x202   : > { %s1243_s28 = smov %s1245_s8  ;;  %21 = sbr.rel (!%p19_p6) target bundleno = 6 (0x6), region = 95 }
 0x207   :  { %568 = vsyncpa [#allocation3], 1 }
 0x208   :  { %570 = vsyncpa [#allocation3 + $0x1], 1 }
 0x209   :  { %571 = vsyncpa [#allocation4], 1 }
 0x20a   :  { %573 = vsyncpa [#allocation4 + $0x1], 1 }
 0x20b   :  { %574 = vsyncpa [#allocation6], 1 }

// kernel: _batch.2
= control target key start
LH: loop header
LB: loop body
LE: loop exit
PB: predicated region body
PF: predicated region fallthrough
CT: control target
= control target key end

     0   :  { %11 = vsyncpa [#allocation4], 0  ;;  %s1198_s0 = inlined_call_operand.vmem [shape: f32[3], index: 0, kind: input, shape index: {}]   ;;  %s1199_s1 = inlined_call_operand.vmem [shape: f32[3], index: 1, kind: input, shape index: {}]   ;;  %s1200_s2 = inlined_call_operand.vmem [shape: s32[2], index: 2, kind: input, shape index: {}]   ;;  %s1201_s3 = inlined_call_operand.vmem [shape: bf16[3,16,20], index: 3, kind: input, shape index: {}]   ;;  %s1202_s4 = inlined_call_operand.vmem [shape: bf16[32,16], index: 4, kind: input, shape index: {}]   ;;  %s1203_s5 = inlined_call_operand.vmem [shape: bf16[20,32], index: 5, kind: input, shape index: {}]   ;;  %s1204_s6 = inlined_call_operand.hbm [shape: f32[2,3,32,32], index: 6, kind: output, shape index: {}]  }
   0x1   :  { %12 = vsyncpa [#allocation6], 0 }
   0x2   :  { %13 = vsyncpa [#allocation3], 0 }
   0x3   :  { %15 = vsyncpa [#allocation3 + $0x1], 0  ;;  %s980_s21 = smov 0   ;;  %s982_s22 = smov 0  }
   0x4   :  { %s984_s23 = smov 0   ;;  %s986_s24 = smov 0  }
   0x5   :  { %s988_s25 = smov 0   ;;  %s990_s26 = smov 0  }
   0x6 LB: > { %s661_s27 = sadd.s32 4294967295, %s937_s26   ;;  %s662_s28 = sadd.s32 4294967294, %s937_s26   ;;  %s937_s26 = sphi %s990_s26, %s21_s26   ;;  %s933_s25 = sphi %s988_s25, %s1230_s25   ;;  %s929_s24 = sphi %s986_s24, %s1229_s24   ;;  %s925_s23 = sphi %s984_s23, %s1228_s23   ;;  %s921_s22 = sphi %s982_s22, %s1227_s22   ;;  %s917_s21 = sphi %s980_s21, %s1226_s21  }
   0x7   : > { %s33_s29 = sadd.s32 1, %s933_s25  ;;  %s178_s30 = sadd.s32 1, %s925_s23 }
   0x8   : > { %p35_p0 = scmp.ge.s32.totalorder %s33_s29, 3  ;;  %p188_p1 = scmp.ne.s32.totalorder %s925_s23, %s921_s22 }
   0x9   : > { %p189_p2 = scmp.eq.s32.totalorder %s661_s27, 2  ;;  %p194_p3 = scmp.ne.s32.totalorder %s921_s22, %s917_s21 }
   0xa   : > { %s1232_s29 = smov (%p35_p0, %s33_s29), 0  ;;  %p195_p5 = scmp.eq.s32.totalorder %s662_s28, 2 }
   0xb   : > { %p1020_p4 = por %p189_p2, %p188_p1  ;;  %s173_s8 = ssub.s32 %s933_s25, %s1232_s29 }
   0xc   : > { %p663_p6 = scmp.ge.s32.totalorder %s937_s26, 1  ;;  %p176_p7 = scmp.eq.s32.totalorder %s173_s8, 0 }
   0xd   : > { %s1209_s7 = scalar_select %p1020_p4, 1, 0 }
   0xe   : > { %p1027_p8 = por %p195_p5, %p194_p3  ;;  %p202_p9 = scmp.lt.s32.totalorder %s937_s26, 4 }
   0xf   : > { %s1033_s10 = scalar_select %p176_p7, %s925_s23, %s178_s30  }
  0x10   : > { %s1210_s9 = scalar_select %p1027_p8, 1, 0 }
  0x11   : > { %p1035_p10 = pnand %p663_p6, %p202_p9  ;;  %p1039_p11 = scmp.eq.s32.totalorder %s661_s27, 0 }
  0x12   : > { %s226_s15 = sshll.u32 %s1199_s1, 4  ;;  %s215_s18 = sshll.u32 %s1198_s0, 4  ;;  %s227_s15 = int_to_ptr.vmem [resolvable:$true] %s226_s15  ;;  %s216_s18 = int_to_ptr.vmem [resolvable:$true] %s215_s18 }
  0x13   : > { %s1211_s11 = scalar_select %p1035_p10, 1, 0 }
  0x14   : > { %s1212_s12 = scalar_select %p1039_p11, 1, 0 }
  0x15   : > { %p729_p12 = pneg %p1035_p10  ;;  %s237_s28 = sshll.u32 %s1200_s2, 4  ;;  %s238_s28 = int_to_ptr.vmem [resolvable:$true] %s237_s28 }
  0x16   : > { %s808_s30 = scalar_lea.vmem %s227_s15, 16  ;;  %p816_p5 = scmp.lt.s32.totalorder %s227_s15, %s227_s15 }
  0x17   : > { %p1053_p13 = pnand %p1039_p11, %p729_p12  ;;  %p809_p0 = scmp.ne.s32.totalorder %s227_s15, %s808_s30 }
  0x18   : > { %p817_p6 = scmp.lt.s32.totalorder %s808_s30, %s808_s30 }
  0x19   : > { %p810_p1 = pneg %p1053_p13 }
  0x1a   : > { %p818_p7 = por %p817_p6, %p816_p5 }
  0x1b   : > { %p811_p2 = pnand %p810_p1, %p809_p0 }
  0x1d   : > { %p812_p3 = pneg %p811_p2 }
  0x1f   : > { %p819_p9 = pnand %p818_p7, %p812_p3 }
  0x21   : > { %822 = shalt.err (!%p819_p9)
}
  0x22   : > { %s939_s8 = smov [#allocation5]   ;;  %s823_s13 = scalar_lea.vmem %s216_s18, 16 }
  0x23   : > { %735 = dma.vmem_to_smem (!%p1053_p13), %s227_s15, 16, %s939_s8, [#allocation6]  }
  0x24   : > { %p824_p12 = scmp.ne.s32.totalorder %s216_s18, %s823_s13  ;;  %p831_p11 = scmp.lt.s32.totalorder %s216_s18, %s216_s18 }
  0x25   : > { %p832_p10 = scmp.lt.s32.totalorder %s823_s13, %s823_s13 }
  0x26   : > { %p826_p8 = pnand %p824_p12, %p810_p1 }
  0x27   : > { %p833_p0 = por %p832_p10, %p831_p11 }
  0x28   : > { %p827_p4 = pneg %p826_p8 }
  0x2a   : > { %p834_p2 = pnand %p833_p0, %p827_p4 }
  0x2c   : > { %837 = shalt.err (!%p834_p2)
}
  0x2d   : > { %s940_s14 = smov [#allocation2]   ;;  %s838_s16 = scalar_lea.vmem %s238_s28, 16 }
  0x2e   : > { %732 = dma.vmem_to_smem (!%p1053_p13), %s216_s18, 16, %s940_s14, [#allocation4]  }
  0x2f   : > { %p839_p3 = scmp.ne.s32.totalorder %s238_s28, %s838_s16  ;;  %p846_p7 = scmp.lt.s32.totalorder %s238_s28, %s238_s28 }
  0x30   : > { %p847_p9 = scmp.lt.s32.totalorder %s838_s16, %s838_s16 }
  0x31   : > { %p841_p5 = pnand %p839_p3, %p810_p1 }
  0x32   : > { %p848_p8 = por %p847_p9, %p846_p7 }
  0x33   : > { %p842_p6 = pneg %p841_p5 }
  0x35   : > { %p849_p12 = pnand %p848_p8, %p842_p6 }
  0x37   : > { %852 = shalt.err (!%p849_p12)
}
  0x38   : > { %s941_s15 = smov [#allocation7]   ;;  %p1214_p4 = scmp.ne.s32.totalorder %s1211_s11, 0 }
  0x39   : > { %738 = dma.vmem_to_smem (!%p1053_p13), %s238_s28, 16, %s941_s15, [#allocation6]  }
  0x3a   : > { %270 = sbr.rel (%p1214_p4) target bundleno = 498 (0x1f2), region = 44  ;;  %p1215_p10 = scmp.ne.s32.totalorder (!%p1214_p4), %s1212_s12, 0 }
  0x3f   : > { %904 = dma.done.wait (%p1215_p10), [#allocation4], 16  }
  0x40   : > { %906 = vsyncadd (%p1215_p10), [#allocation4], 4294967280 }
  0x41   : > { %908 = dma.done.wait (%p1215_p10), [#allocation6], 32  }
  0x42   : > { %910 = vsyncadd (%p1215_p10), [#allocation6], 4294967264 }
  0x43   : > { %284 = sfence }
  0x44   : > { %p314_p11 = scmp.lt.s32.totalorder %s929_s24, 2  ;;  %v804_v0 = vld [vmem:[%s1202_s4] sm:$0xff]   ;;  %vm349_vm0 = vcmask 130048   ;;  %v805_v2 = vld [vmem:[%s1202_s4 + $0x8] sm:$0xff]   ;;  %vm426_vm1 = vcmask 1041408   ;;  %vm419_vm2 = vcmask 162816   ;;  %v480_v12 = vlaneseq }
  0x45   : > { %702 = vmatprep.mubr.msk.bf16.mxu0 %vm349_vm0, %v804_v0  ;;  %v806_v3 = vld [vmem:[%s1203_s5 + $0x8] ss:$0 sps:$4 sm:$0x33]   ;;  %v807_v5 = vld [vmem:[%s1203_s5] sm:$0xff]   ;;  %s492_s15 = sld [smem:[#allocation7]]  ;;  %vm521_vm11 = vcmask 261120  }
  0x46   : > { %s315_s11 = scalar_select %p314_p11, %s929_s24, 2  ;;  %714 = vmatprep.subr.msk.bf16.mxu1 %vm426_vm1, %v806_v3  ;;  %v428_v4 = vsel %vm426_vm1, %v806_v3, 0  ;;  %v481_v13 = vshrl.u32 %v480_v12, 7  ;;  %v491_v15 = vand.u32 127, %v480_v12 }
  0x47   : > { %707 = vmatpush3.bf16.msra.mxu1 %v428_v4  ;;  %s685_s17 = sld [smem:[#allocation7 + $0x1]]  ;;  %s692_s12 = sshll.u32 %s929_s24, 9 }
  0x48   : > { %s691_s19 = sshll.u32 %s315_s11, 3  ;;  %708 = vmatprep.subr.bf16.mxu1 %v807_v5  ;;  %s505_s18 = sld [smem:[#allocation5 + %s929_s24]]  ;;  %v483_v14 = vadd.s32 16, %v481_v13  ;;  %v484_v19 = vadd.s32 24, %v481_v13  ;;  %v482_v20 = vadd.s32 8, %v481_v13 }
  0x49   : > { %s318_s28 = scalar_lea.vmem %s1201_s3, %s691_s19  ;;  %s511_s11 = sld [smem:[#allocation2 + %s929_s24]] }
  0x4a   : > { %v803_v1 = vld [vmem:[%s318_s28] sm:$0xff]   ;;  %s311_s19 = sand.u32 1, %s921_s22   ;;  %s1145_s13 = scalar_lea.hbm %s1204_s6, %s692_s12 }
  0x4b   : > { %700 = vmatprep.subr.bf16.mxu0 %v803_v1  ;;  %709 = vmatpush3.bf16.msra.mxu1 %v807_v5  ;;  %v493_v16 = vstv %s492_s15  ;;  %s673_s20 = sshll.u32 %s311_s19, 5  ;;  %s1153_s24 = scalar_lea.sflag [#allocation3], %s311_s19 }
  0x4c   : > { %701 = vmatpush3.bf16.msra.mxu0 %v803_v1  ;;  %vm496_vm3 = vcmp.lt.s32.totalorder %v483_v14, %v493_v16  ;;  %vm494_vm5 = vcmp.lt.s32.totalorder %v481_v13, %v493_v16  ;;  %vm497_vm7 = vcmp.lt.s32.totalorder %v484_v19, %v493_v16  ;;  %vm495_vm9 = vcmp.lt.s32.totalorder %v482_v20, %v493_v16  ;;  %s313_s27 = scalar_lea.vmem [#allocation8], %s673_s20  ;;  %p1224_p1 = scmp.ne.s32.totalorder %s1209_s7, 0 }
  0x4d   : > { %v499_v17 = vstv %s685_s17  ;;  %s542_s28 = sshll.u32 %s313_s27, 4  ;;  %s942_s16 = smov [#allocation8]   ;;  %s1147_s28 = int_to_ptr.vmem [resolvable:$true] %s542_s28 }
  0x4e   : > { %vm1106_vm4 = vcmp.lt.s32.totalorder %v491_v15, %v499_v17  ;;  %v506_v21 = vstv %s505_s18  ;;  %s853_s14 = scalar_lea.vmem %s1147_s28, 512  ;;  %s857_s15 = sshll.u32 %s942_s16, 4  ;;  %s858_s15 = int_to_ptr.vmem [resolvable:$false] %s857_s15 }
  0x4f   : > { %703 = vmatmul.mubr.msk.bf16.vlgmr.msra.gmra.mxu0 %vm349_vm0, %v805_v2  ;;  %vm503_vm6 = vmand %vm496_vm3, %vm1106_vm4  ;;  %v512_v22 = vstv %s511_s11  ;;  %p854_p13 = scmp.ne.s32.totalorder %s1147_s28, %s853_s14  ;;  %s859_s17 = scalar_lea.vmem %s858_s15, 1024 }
  0x50   : > { %vm1117_vm8 = vmand %vm494_vm5, %vm1106_vm4  ;;  %v509_v25 = vsel %vm503_vm6, %v506_v21, 0.0  ;;  %p860_p3 = scmp.lt.s32.totalorder %s1147_s28, %s858_s15  ;;  %p861_p5 = scmp.lt.s32.totalorder %s859_s17, %s853_s14 }
  0x51   : > { %vm1123_vm10 = vmand %vm497_vm7, %vm1106_vm4  ;;  %v507_v29 = vsel %vm1117_vm8, %v506_v21, 0.0  ;;  %p855_p0 = pnand %p854_p13, %p1224_p1 }
  0x52   : > { %vm1131_vm12 = vmand %vm495_vm9, %vm1106_vm4  ;;  %v510_v34 = vsel %vm1123_vm10, %v506_v21, 0.0  ;;  %p862_p6 = por %p861_p5, %p860_p3 }
  0x53   : > { %v508_v38 = vsel %vm1131_vm12, %v506_v21, 0.0  ;;  %p856_p2 = pneg %p855_p0 }
  0x55   : > { %p863_p7 = pnand %p862_p6, %p856_p2 }
 0x10f   : > { %v704_v6 = vpop.f32.mrf.mxu0 }
 0x111   : > { %v390_v7 = vpop.f32.mrf.mxu0 }
 0x113   : > { %v705_v8 = vpop.f32.mrf.mxu0 }
 0x114   : > { %v406_v11 = vpack.c.bf16 %v705_v8, %v704_v6 }
 0x115   : > { %v393_v9 = vpop.f32.mrf.mxu0 }
 0x116   : > { %v405_v10 = vpack.c.bf16 %v393_v9, %v390_v7 }
 0x118   : > { %710 = vmatprep.mubr.msk.bf16.mxu1 %vm419_vm2, %v405_v10 }
 0x119   : > { %711 = vmatmul.mubr.msk.bf16.vlgmr.msra.gmra.mxu1 %vm419_vm2, %v406_v11 }
 0x1d9   : > { %v712_v24 = vpop.f32.mrf.mxu1 }
 0x1da   : > { %v515_v26 = vmul.f32 %v712_v24, %v512_v22 }
 0x1db   : > { %v464_v28 = vpop.f32.mrf.mxu1 }
 0x1dc   : > { %v519_v30 = vsub.f32 %v515_v26, %v509_v25  ;;  %v513_v31 = vmul.f32 %v512_v22, %v464_v28 }
 0x1dd   : > { %v713_v33 = vpop.f32.mrf.mxu1 }
 0x1de   : > { %524 = vst.msk [vmem:[%s313_s27 + $0x10] sm:$0xff] %vm521_vm11, %v519_v30  ;;  %v517_v35 = vsub.f32 %v513_v31, %v507_v29  ;;  %v516_v36 = vmul.f32 %v713_v33, %v512_v22 }
 0x1df   : > { %v467_v37 = vpop.f32.mrf.mxu1 }
 0x1e0   : > { %522 = vst.msk [vmem:[%s313_s27] sm:$0xff] %vm521_vm11, %v517_v35  ;;  %v520_v39 = vsub.f32 %v516_v36, %v510_v34  ;;  %v514_v40 = vmul.f32 %v512_v22, %v467_v37 }
 0x1e2   : > { %525 = vst.msk [vmem:[%s313_s27 + $0x18] sm:$0xff] %vm521_vm11, %v520_v39  ;;  %v518_v41 = vsub.f32 %v514_v40, %v508_v38 }
 0x1e4   : > { %523 = vst.msk [vmem:[%s313_s27 + $0x8] sm:$0xff] %vm521_vm11, %v518_v41 }
 0x1e5   : > { %866 = shalt.err (!%p863_p7)
}
 0x1e6   : > { %s867_s18 = scalar_lea.hbm %s1145_s13, 512  ;;  %s871_s20 = scalar_lea.hbm %s1204_s6, 3072 }
 0x1e7   : > { %p868_p9 = scmp.ne.s32.totalorder %s1145_s13, %s867_s18  ;;  %p872_p4 = scmp.lt.s32.totalorder %s1145_s13, %s1204_s6 }
 0x1e8   : > { %p873_p10 = scmp.lt.s32.totalorder %s871_s20, %s867_s18 }
 0x1e9   : > { %p869_p8 = pnand %p868_p9, %p1224_p1 }
 0x1ea   : > { %p874_p11 = por %p873_p10, %p872_p4 }
 0x1eb   : > { %p870_p12 = pneg %p869_p8 }
 0x1ed   : > { %p875_p13 = pnand %p874_p11, %p870_p12 }
 0x1ef   : > { %878 = shalt.err (!%p875_p13)
}
 0x1f0   : > { %s943_s30 = smov 128   ;;  %s944_s8 = smov 8  }
 0x1f1   : > { %727 = dma.vmem_to_hbm [thread:$0]  (%p1224_p1), %s1147_s28, 512, %s1145_s13, %s1153_s24, %s943_s30, %s943_s30, %s944_s8  }
 0x1f2 PF: > { %p749_p0 = scmp.ge.s32.totalorder %s937_s26, 2  ;;  %s557_s14 = sand.u32 1, %s917_s21  }
 0x1f3   : > { %p1225_p2 = scmp.ne.s32.totalorder %s1210_s9, 0  ;;  %s558_s16 = scalar_lea.sflag [#allocation3], %s557_s14 }
 0x1f5   : > { %p740_p3 = pnand %p749_p0, %p1225_p2 }
 0x1f7   : > { %p741_p5 = pneg %p740_p3 }
 0x1f9   : > { %912 = dma.done.wait (%p741_p5), %s558_s16, 512  }
 0x1fa   : > { %914 = vsyncadd (%p741_p5), %s558_s16, 4294966784  ;;  %s21_s26 = sadd.s32 1, %s937_s26   ;;  %s1226_s21 = smov %s921_s22 }
 0x1fb   : > { %p18_p6 = scmp.ge.s32.totalorder %s21_s26, 5   ;;  %s1227_s22 = smov %s925_s23 }
 0x1fc   : > { %s1228_s23 = smov %s1033_s10  ;;  %s1229_s24 = smov %s933_s25 }
 0x1fd   : > { %s1230_s25 = smov %s1232_s29  ;;  %20 = sbr.rel (!%p18_p6) target bundleno = 6 (0x6), region = 95 }
 0x202   :  { %563 = vsyncpa [#allocation3], 1 }
 0x203   :  { %565 = vsyncpa [#allocation3 + $0x1], 1 }
 0x204   :  { %566 = vsyncpa [#allocation4], 1 }
 0x205   :  { %568 = vsyncpa [#allocation4 + $0x1], 1 }
 0x206   :  { %569 = vsyncpa [#allocation6], 1 }

</bundles_post_ra>
